<compile_context>
chip_gen: v5e
topology: v5e:2x2
jax: 0.10.0
libtpu: 0.0.40
codegen_flags: <defaults>
</compile_context>

<pallas_src>
from functools import partial

import jax
import jax.numpy as jnp
from jax.experimental import pallas as pl
from jax.experimental.pallas import tpu as pltpu


def mlp_d_kernel(x_ref, w1_ref, wp_ref, bp_ref, o_ref):
    # x_ref : (B, D)          bf16
    # w1_ref: (D, ndf)        bf16
    # wp_ref: (2*ndf+1, ndf)  bf16  -> rows [0:ndf]=w2, [ndf:2ndf]=w3, [2ndf]=w4^T
    # bp_ref: (4, ndf)        f32   -> rows: b1, b2, b3, (b4 at [3, 0])
    ndf = w1_ref.shape[1]

    x = x_ref[...]

    # layer 1: bf16 MXU matmul, f32 accumulate, f32 bias / ReLU
    h = jnp.dot(x, w1_ref[...], preferred_element_type=jnp.float32) + bp_ref[0:1, :]
    h = jnp.maximum(h, 0.0)

    # layer 2
    h = jnp.dot(h.astype(jnp.bfloat16), wp_ref[0:ndf, :],
                preferred_element_type=jnp.float32) + bp_ref[1:2, :]
    h = jnp.maximum(h, 0.0)

    # layer 3
    h = jnp.dot(h.astype(jnp.bfloat16), wp_ref[ndf:2 * ndf, :],
                preferred_element_type=jnp.float32) + bp_ref[2:3, :]
    h = jnp.maximum(h, 0.0)

    # layer 4 (out_features=1): VPU multiply + lane reduce (skips an N=1 MXU
    # pass), then the batch mean; b4 folded in after the mean.
    w4_row = wp_ref[2 * ndf:2 * ndf + 1, :].astype(jnp.float32)     # (1, ndf)
    logit = jnp.sum(h * w4_row, axis=-1, keepdims=True)              # (B, 1)
    o_ref[...] = jnp.mean(logit, axis=0, keepdims=True) + bp_ref[3:4, 0:1]


@partial(jax.jit, static_argnames=())
def mlp_d_forward(x_nchw, params):
    """Pallas implementation of MLP_D.forward. Returns shape (1,) float32."""
    b = x_nchw.shape[0]
    w1, b1, w2, b2, w3, b3, w4, b4 = params
    d_in, ndf = w1.shape

    # bf16 inputs for the MXU; biases stay f32.
    x_flat = x_nchw.reshape(b, -1).astype(jnp.bfloat16)              # (B, D)
    w1_bf = w1.astype(jnp.bfloat16)                                  # (D, ndf)

    # Pack the small weights into one bf16 slab: w2, w3, w4^T stacked on rows.
    w_packed = jnp.concatenate(
        [w2, w3, w4.reshape(1, ndf)], axis=0).astype(jnp.bfloat16)   # (2*ndf+1, ndf)

    # Pack biases into one f32 slab: rows b1, b2, b3, and b4 at [3, 0].
    b4_row = jnp.zeros((1, ndf), jnp.float32).at[0, 0].set(b4.reshape(()))
    b_packed = jnp.concatenate(
        [b1.reshape(1, ndf), b2.reshape(1, ndf), b3.reshape(1, ndf), b4_row],
        axis=0).astype(jnp.float32)                                   # (4, ndf)

    operands = (x_flat, w1_bf, w_packed, b_packed)

    flops = 2 * b * (d_in * ndf + 2 * ndf * ndf + ndf)
    bytes_accessed = (x_flat.size * 2 + w1_bf.size * 2 +
                      w_packed.size * 2 + b_packed.size * 4 + 4)
    cost = pl.CostEstimate(flops=flops, transcendentals=0,
                           bytes_accessed=bytes_accessed)

    vmem_spec = pl.BlockSpec(memory_space=pltpu.MemorySpace.VMEM)
    out = pl.pallas_call(
        mlp_d_kernel,
        out_shape=jax.ShapeDtypeStruct((1, 1), jnp.float32),
        in_specs=[vmem_spec] * len(operands),
        out_specs=vmem_spec,
        cost_estimate=cost,
    )(*operands)
    return out.reshape(1)


def init_params(key, d_in, ndf):
    """nn.Linear-style init: U(-1/sqrt(fan_in), +1/sqrt(fan_in)).
    Weights stored transposed (in, out) relative to torch's (out, in)."""
    ks = jax.random.split(key, 8)

    def linear(kw, kb, fan_in, fan_out):
        bound = 1.0 / jnp.sqrt(fan_in)
        w = jax.random.uniform(kw, (fan_in, fan_out), jnp.float32, -bound, bound)
        bia = jax.random.uniform(kb, (1, fan_out), jnp.float32, -bound, bound)
        return w, bia

    w1, b1 = linear(ks[0], ks[1], d_in, ndf)
    w2, b2 = linear(ks[2], ks[3], ndf, ndf)
    w3, b3 = linear(ks[4], ks[5], ndf, ndf)
    w4, b4 = linear(ks[6], ks[7], ndf, 1)
    return (w1, b1, w2, b2, w3, b3, w4, b4)


if __name__ == "__main__":
    # Small shapes consistent with MLP_D(isize=16, nz=8, nc=4, ndf=32, ngpu=1)
    batch, nc, isize, ndf = 2, 4, 16, 32
    d_in = nc * isize * isize  # 1024

    key = jax.random.PRNGKey(0)
    k_x, k_p = jax.random.split(key)
    x = jax.random.normal(k_x, (batch, nc, isize, isize), dtype=jnp.float32)
    params = init_params(k_p, d_in, ndf)

    out = mlp_d_forward(x, params)
    jax.block_until_ready(out)

    # Reference with matching bf16 matmul inputs / f32 accumulation.
    w1, b1, w2, b2, w3, b3, w4, b4 = params
    x_flat = x.reshape(batch, -1).astype(jnp.bfloat16)
    h = jnp.dot(x_flat, w1.astype(jnp.bfloat16),
                preferred_element_type=jnp.float32) + b1
    h = jnp.maximum(h, 0.0)
    h = jnp.dot(h.astype(jnp.bfloat16), w2.astype(jnp.bfloat16),
                preferred_element_type=jnp.float32) + b2
    h = jnp.maximum(h, 0.0)
    h = jnp.dot(h.astype(jnp.bfloat16), w3.astype(jnp.bfloat16),
                preferred_element_type=jnp.float32) + b3
    h = jnp.maximum(h, 0.0)
    logit = jnp.sum(h * w4.reshape(1, ndf).astype(jnp.bfloat16).astype(jnp.float32),
                    axis=-1, keepdims=True)
    ref = (jnp.mean(logit, axis=0) + b4.reshape(())).reshape(1)

    assert out.shape == (1,), out.shape
    assert jnp.allclose(out, ref, atol=2e-3, rtol=2e-3), (out, ref)

    # Loose sanity check against the full-f32 reference path.
    xf = x.reshape(batch, -1)
    hf = jnp.maximum(xf @ w1 + b1, 0.0)
    hf = jnp.maximum(hf @ w2 + b2, 0.0)
    hf = jnp.maximum(hf @ w3 + b3, 0.0)
    ref_f32 = jnp.mean(hf @ w4 + b4, axis=0).reshape(1)
    assert jnp.allclose(out, ref_f32, atol=5e-2, rtol=5e-2), (out, ref_f32)

    print("KERNEL_OK")
</pallas_src>

<mosaic_0001>
module attributes {stable_mosaic.version = 11 : i64} {
  func.func @mlp_d_kernel(%arg0: memref<2x1024xbf16, #tpu.memory_space<vmem>>, %arg1: memref<1024x32xbf16, #tpu.memory_space<vmem>>, %arg2: memref<65x32xbf16, #tpu.memory_space<vmem>>, %arg3: memref<4x32xf32, #tpu.memory_space<vmem>>, %arg4: memref<1x1xf32, #tpu.memory_space<vmem>>) attributes {dimension_semantics = [], scalar_prefetch = 0 : i64, scratch_operands = 0 : i64, tpu.core_type = #tpu.core_type<tc>} {
    %c0 = arith.constant 0 : index
    %c0_0 = arith.constant 0 : index
    %0 = vector.load %arg0[%c0, %c0_0] : memref<2x1024xbf16, #tpu.memory_space<vmem>>, vector<2x1024xbf16>
    %c0_1 = arith.constant 0 : index
    %c0_2 = arith.constant 0 : index
    %1 = vector.load %arg1[%c0_1, %c0_2] : memref<1024x32xbf16, #tpu.memory_space<vmem>>, vector<1024x32xbf16>
    %cst = arith.constant dense<0.000000e+00> : vector<2x32xf32>
    %2 = tpu.matmul %0, %1, %cst {dimension_numbers = #tpu.dot_dimension_numbers<[1], [0], [0], [1], [0, 0, 1, 1], [], []>} : vector<2x1024xbf16>, vector<1024x32xbf16>, vector<2x32xf32> -> vector<2x32xf32>
    %c0_3 = arith.constant 0 : index
    %c0_4 = arith.constant 0 : index
    %3 = vector.load %arg3[%c0_3, %c0_4] : memref<4x32xf32, #tpu.memory_space<vmem>>, vector<1x32xf32>
    %4 = vector.broadcast %3 : vector<1x32xf32> to vector<2x32xf32>
    %5 = arith.addf %2, %4 : vector<2x32xf32>
    %cst_5 = arith.constant 0.000000e+00 : f32
    %6 = vector.broadcast %cst_5 : f32 to vector<2x32xf32>
    %7 = arith.maximumf %5, %6 : vector<2x32xf32>
    %8 = arith.truncf %7 : vector<2x32xf32> to vector<2x32xbf16>
    %c0_6 = arith.constant 0 : index
    %c0_7 = arith.constant 0 : index
    %9 = vector.load %arg2[%c0_6, %c0_7] : memref<65x32xbf16, #tpu.memory_space<vmem>>, vector<32x32xbf16>
    %cst_8 = arith.constant dense<0.000000e+00> : vector<2x32xf32>
    %10 = tpu.matmul %8, %9, %cst_8 {dimension_numbers = #tpu.dot_dimension_numbers<[1], [0], [0], [1], [0, 0, 1, 1], [], []>} : vector<2x32xbf16>, vector<32x32xbf16>, vector<2x32xf32> -> vector<2x32xf32>
    %c1 = arith.constant 1 : index
    %c0_9 = arith.constant 0 : index
    %11 = vector.load %arg3[%c1, %c0_9] : memref<4x32xf32, #tpu.memory_space<vmem>>, vector<1x32xf32>
    %12 = vector.broadcast %11 : vector<1x32xf32> to vector<2x32xf32>
    %13 = arith.addf %10, %12 : vector<2x32xf32>
    %cst_10 = arith.constant 0.000000e+00 : f32
    %14 = vector.broadcast %cst_10 : f32 to vector<2x32xf32>
    %15 = arith.maximumf %13, %14 : vector<2x32xf32>
    %16 = arith.truncf %15 : vector<2x32xf32> to vector<2x32xbf16>
    %c32 = arith.constant 32 : index
    %c0_11 = arith.constant 0 : index
    %17 = vector.load %arg2[%c32, %c0_11] : memref<65x32xbf16, #tpu.memory_space<vmem>>, vector<32x32xbf16>
    %cst_12 = arith.constant dense<0.000000e+00> : vector<2x32xf32>
    %18 = tpu.matmul %16, %17, %cst_12 {dimension_numbers = #tpu.dot_dimension_numbers<[1], [0], [0], [1], [0, 0, 1, 1], [], []>} : vector<2x32xbf16>, vector<32x32xbf16>, vector<2x32xf32> -> vector<2x32xf32>
    %c2 = arith.constant 2 : index
    %c0_13 = arith.constant 0 : index
    %19 = vector.load %arg3[%c2, %c0_13] : memref<4x32xf32, #tpu.memory_space<vmem>>, vector<1x32xf32>
    %20 = vector.broadcast %19 : vector<1x32xf32> to vector<2x32xf32>
    %21 = arith.addf %18, %20 : vector<2x32xf32>
    %cst_14 = arith.constant 0.000000e+00 : f32
    %22 = vector.broadcast %cst_14 : f32 to vector<2x32xf32>
    %23 = arith.maximumf %21, %22 : vector<2x32xf32>
    %c64 = arith.constant 64 : index
    %c0_15 = arith.constant 0 : index
    %24 = vector.load %arg2[%c64, %c0_15] : memref<65x32xbf16, #tpu.memory_space<vmem>>, vector<1x32xbf16>
    %25 = arith.extf %24 : vector<1x32xbf16> to vector<1x32xf32>
    %26 = vector.broadcast %25 : vector<1x32xf32> to vector<2x32xf32>
    %27 = arith.mulf %23, %26 : vector<2x32xf32>
    %cst_16 = arith.constant dense<0.000000e+00> : vector<2xf32>
    %28 = vector.multi_reduction <add>, %27, %cst_16 [1] : vector<2x32xf32> to vector<2xf32>
    %29 = vector.shape_cast %28 : vector<2xf32> to vector<2x1xf32>
    %cst_17 = arith.constant dense<0.000000e+00> : vector<1xf32>
    %30 = vector.multi_reduction <add>, %29, %cst_17 [0] : vector<2x1xf32> to vector<1xf32>
    %31 = vector.shape_cast %30 : vector<1xf32> to vector<1x1xf32>
    %cst_18 = arith.constant 2.000000e+00 : f32
    %32 = vector.broadcast %cst_18 : f32 to vector<1x1xf32>
    %33 = arith.divf %31, %32 : vector<1x1xf32>
    %c3 = arith.constant 3 : index
    %c0_19 = arith.constant 0 : index
    %34 = vector.load %arg3[%c3, %c0_19] : memref<4x32xf32, #tpu.memory_space<vmem>>, vector<1x1xf32>
    %35 = arith.addf %33, %34 : vector<1x1xf32>
    %c0_20 = arith.constant 0 : index
    %c0_21 = arith.constant 0 : index
    %36 = vector.load %arg4[%c0_20, %c0_21] : memref<1x1xf32, #tpu.memory_space<vmem>>, vector<1x1xf32>
    tpu.vector_store %arg4[%c0_20, %c0_21], %35 {strides = array<i32>} : memref<1x1xf32, #tpu.memory_space<vmem>>, vector<1x1xf32>,
    return
  }
}

</mosaic_0001>

<bundles_post_ra>
// kernel: mlp_d_forward.1
= control target key start
LH: loop header
LB: loop body
LE: loop exit
PB: predicated region body
PF: predicated region fallthrough
CT: control target
= control target key end

     0   :  { %s1401_s0 = inlined_call_operand.vmem [shape: bf16[2,1024], index: 0, kind: input, shape index: {}]   ;;  %s1402_s1 = inlined_call_operand.vmem [shape: bf16[1024,32], index: 1, kind: input, shape index: {}]   ;;  %s1403_s2 = inlined_call_operand.vmem [shape: bf16[65,32], index: 2, kind: input, shape index: {}]   ;;  %s1404_s3 = inlined_call_operand.vmem [shape: f32[4,32], index: 3, kind: input, shape index: {}]   ;;  %s1405_s4 = inlined_call_operand.hbm [shape: f32[1,1], index: 4, kind: output, shape index: {}]  }
   0x1   :  { %v1055_v0 = vld [vmem:[%s1402_s1 + $0x38] sm:$0xff]  ;;  %v1054_v4 = vld [vmem:[%s1402_s1 + $0x30] sm:$0xff]  ;;  %v1053_v8 = vld [vmem:[%s1402_s1 + $0x28] sm:$0xff] }
   0x2   :  { %v1063_v1 = vld [vmem:[%s1402_s1 + $0x78] sm:$0xff]  ;;  %552 = vmatpush.bf16.msra.mxu0 %v1055_v0  ;;  %v1062_v5 = vld [vmem:[%s1402_s1 + $0x70] sm:$0xff]  ;;  %v1061_v9 = vld [vmem:[%s1402_s1 + $0x68] sm:$0xff] }
   0x3   :  { %v1071_v2 = vld [vmem:[%s1402_s1 + $0xb8] sm:$0xff]  ;;  %565 = vmatpush.bf16.msra.mxu1 %v1063_v1  ;;  %v1070_v6 = vld [vmem:[%s1402_s1 + $0xb0] sm:$0xff]  ;;  %v1069_v10 = vld [vmem:[%s1402_s1 + $0xa8] sm:$0xff] }
   0x4   :  { %v1079_v3 = vld [vmem:[%s1402_s1 + $0xf8] sm:$0xff]  ;;  %578 = vmatpush.bf16.msra.mxu2 %v1071_v2  ;;  %v1078_v7 = vld [vmem:[%s1402_s1 + $0xf0] sm:$0xff]  ;;  %v1077_v11 = vld [vmem:[%s1402_s1 + $0xe8] sm:$0xff] }
   0x5   :  { %591 = vmatpush.bf16.msra.mxu3 %v1079_v3  ;;  %v1052_v12 = vld [vmem:[%s1402_s1 + $0x20] sm:$0xff]  ;;  %v1051_v17 = vld [vmem:[%s1402_s1 + $0x18] sm:$0xff]  ;;  %v1050_v21 = vld [vmem:[%s1402_s1 + $0x10] sm:$0xff] }
   0x6   :  { %553 = vmatpush.bf16.msra.mxu0 %v1054_v4  ;;  %v1060_v13 = vld [vmem:[%s1402_s1 + $0x60] sm:$0xff]  ;;  %v1059_v18 = vld [vmem:[%s1402_s1 + $0x58] sm:$0xff]  ;;  %v1058_v22 = vld [vmem:[%s1402_s1 + $0x50] sm:$0xff] }
   0x7   :  { %566 = vmatpush.bf16.msra.mxu1 %v1062_v5  ;;  %v1068_v14 = vld [vmem:[%s1402_s1 + $0xa0] sm:$0xff]  ;;  %v1067_v19 = vld [vmem:[%s1402_s1 + $0x98] sm:$0xff]  ;;  %v1066_v23 = vld [vmem:[%s1402_s1 + $0x90] sm:$0xff] }
   0x8   :  { %579 = vmatpush.bf16.msra.mxu2 %v1070_v6  ;;  %v1076_v15 = vld [vmem:[%s1402_s1 + $0xe0] sm:$0xff]  ;;  %v1075_v20 = vld [vmem:[%s1402_s1 + $0xd8] sm:$0xff]  ;;  %v1074_v24 = vld [vmem:[%s1402_s1 + $0xd0] sm:$0xff] }
   0x9   :  { %592 = vmatpush.bf16.msra.mxu3 %v1078_v7  ;;  %v19_v16 = vld [vmem:[%s1401_s0] sm:$0xff] }
   0xa   :  { %554 = vmatpush.bf16.msra.mxu0 %v1053_v8  ;;  %151 = vst [vmem:[#allocation1] ss:$9 sm:$0xff] %v19_v16 }
   0xb   :  { %567 = vmatpush.bf16.msra.mxu1 %v1061_v9 }
   0xc   :  { %580 = vmatpush.bf16.msra.mxu2 %v1069_v10 }
   0xd   :  { %593 = vmatpush.bf16.msra.mxu3 %v1077_v11 }
   0xe   :  { %555 = vmatpush.bf16.msra.mxu0 %v1052_v12 }
   0xf   :  { %568 = vmatpush.bf16.msra.mxu1 %v1060_v13 }
  0x10   :  { %581 = vmatpush.bf16.msra.mxu2 %v1068_v14 }
  0x11   :  { %594 = vmatpush.bf16.msra.mxu3 %v1076_v15 }
  0x12   :  { %556 = vmatpush.bf16.msra.mxu0 %v1051_v17 }
  0x13   :  { %569 = vmatpush.bf16.msra.mxu1 %v1059_v18 }
  0x14   :  { %582 = vmatpush.bf16.msra.mxu2 %v1067_v19 }
  0x15   :  { %595 = vmatpush.bf16.msra.mxu3 %v1075_v20 }
  0x16   :  { %9 = vsyncpa [#allocation3], 0  ;;  %557 = vmatpush.bf16.msra.mxu0 %v1050_v21  ;;  %v1049_v25 = vld [vmem:[%s1402_s1 + $0x8] sm:$0xff]  ;;  %v1048_v29 = vld [vmem:[%s1402_s1] sm:$0xff]  ;;  %vm676_vm0 = vcmask 261120   ;;  %vm734_vm1 = vcmask 254976  }
  0x17   :  { %570 = vmatpush.bf16.msra.mxu1 %v1058_v22  ;;  %v1057_v26 = vld [vmem:[%s1402_s1 + $0x48] sm:$0xff]  ;;  %v1056_v30 = vld [vmem:[%s1402_s1 + $0x40] sm:$0xff]  ;;  %v1087_v33 = vld [vmem:[%s1402_s1 + $0x138] sm:$0xff]  ;;  %vm738_vm2 = vcmask 1041408   ;;  %s1150_s27 = smov [#allocation2]   ;;  %s765_s0 = sshll.u32 %s1405_s4, 4  ;;  %s766_s0 = int_to_ptr.hbm [resolvable:$true] %s765_s0 }
  0x18   :  { %583 = vmatpush.bf16.msra.mxu2 %v1066_v23  ;;  %v1065_v27 = vld [vmem:[%s1402_s1 + $0x88] sm:$0xff]  ;;  %v1064_v31 = vld [vmem:[%s1402_s1 + $0x80] sm:$0xff]  ;;  %v1095_v34 = vld [vmem:[%s1402_s1 + $0x178] sm:$0xff]  ;;  %s763_s28 = sshll.u32 %s1150_s27, 4  ;;  %vm756_vm4 = vcmask 0   ;;  %s764_s28 = int_to_ptr.vmem [resolvable:$true] %s763_s28 }
  0x19   :  { %596 = vmatpush.bf16.msra.mxu3 %v1074_v24  ;;  %v1073_v28 = vld [vmem:[%s1402_s1 + $0xc8] sm:$0xff]  ;;  %v1072_v32 = vld [vmem:[%s1402_s1 + $0xc0] sm:$0xff]  ;;  %v1103_v35 = vld [vmem:[%s1402_s1 + $0x1b8] sm:$0xff] }
  0x1a   :  { %558 = vmatpush.bf16.msra.mxu0 %v1049_v25  ;;  %v1111_v36 = vld [vmem:[%s1402_s1 + $0x1f8] sm:$0xff]  ;;  %v1086_v37 = vld [vmem:[%s1402_s1 + $0x130] sm:$0xff]  ;;  %v152_v39 = vld [vmem:[#allocation1] sm:$0xff] }
  0x1b   :  { %571 = vmatpush.bf16.msra.mxu1 %v1057_v26  ;;  %v154_v38 = vld [vmem:[#allocation1 + $0x12] sm:$0xff]  ;;  %v155_v41 = vld [vmem:[#allocation1 + $0x1b] sm:$0xff]  ;;  %v153_v42 = vld [vmem:[#allocation1 + $0x9] sm:$0xff] }
  0x1c   :  { %584 = vmatpush.bf16.msra.mxu2 %v1065_v27  ;;  %v1094_v40 = vld [vmem:[%s1402_s1 + $0x170] sm:$0xff]  ;;  %v1085_v45 = vld [vmem:[%s1402_s1 + $0x128] sm:$0xff]  ;;  %v1084_v49 = vld [vmem:[%s1402_s1 + $0x120] sm:$0xff] }
  0x1d   :  { %597 = vmatpush.bf16.msra.mxu3 %v1073_v28  ;;  %v1102_v43 = vld [vmem:[%s1402_s1 + $0x1b0] sm:$0xff]  ;;  %v1093_v46 = vld [vmem:[%s1402_s1 + $0x168] sm:$0xff]  ;;  %v1092_v50 = vld [vmem:[%s1402_s1 + $0x160] sm:$0xff] }
  0x1e   :  { %559 = vmatpush.bf16.msra.mxu0 %v1048_v29  ;;  %v1110_v44 = vld [vmem:[%s1402_s1 + $0x1f0] sm:$0xff]  ;;  %v1101_v47 = vld [vmem:[%s1402_s1 + $0x1a8] sm:$0xff]  ;;  %v1100_v51 = vld [vmem:[%s1402_s1 + $0x1a0] sm:$0xff] }
  0x1f   :  { %572 = vmatpush.bf16.msra.mxu1 %v1056_v30  ;;  %v1109_v48 = vld [vmem:[%s1402_s1 + $0x1e8] sm:$0xff]  ;;  %v1108_v52 = vld [vmem:[%s1402_s1 + $0x1e0] sm:$0xff]  ;;  %v1083_v53 = vld [vmem:[%s1402_s1 + $0x118] sm:$0xff] }
  0x20   :  { %585 = vmatpush.bf16.msra.mxu2 %v1064_v31  ;;  %v1091_v54 = vld [vmem:[%s1402_s1 + $0x158] sm:$0xff]  ;;  %v1082_v57 = vld [vmem:[%s1402_s1 + $0x110] sm:$0xff]  ;;  %v1081_v61 = vld [vmem:[%s1402_s1 + $0x108] sm:$0xff] }
  0x21   :  { %598 = vmatpush.bf16.msra.mxu3 %v1072_v32  ;;  %560 = vmatmul.bf16.vlgmr.msra.gmra.mxu0 %v152_v39  ;;  %v1099_v55 = vld [vmem:[%s1402_s1 + $0x198] sm:$0xff]  ;;  %v1090_v58 = vld [vmem:[%s1402_s1 + $0x150] sm:$0xff]  ;;  %v1089_v62 = vld [vmem:[%s1402_s1 + $0x148] sm:$0xff] }
  0x22   :  { %604 = vmatpush.bf16.msrb.mxu0 %v1087_v33  ;;  %573 = vmatmul.bf16.vlgmr.msra.gmra.mxu1 %v153_v42  ;;  %v1107_v56 = vld [vmem:[%s1402_s1 + $0x1d8] sm:$0xff]  ;;  %v1098_v59 = vld [vmem:[%s1402_s1 + $0x190] sm:$0xff]  ;;  %v1097_v63 = vld [vmem:[%s1402_s1 + $0x188] sm:$0xff] }
  0x23   :  { %617 = vmatpush.bf16.msrb.mxu1 %v1095_v34  ;;  %586 = vmatmul.bf16.vlgmr.msra.gmra.mxu2 %v154_v38  ;;  %v1106_v60 = vld [vmem:[%s1402_s1 + $0x1d0] sm:$0xff]  ;;  %v1105_v0 = vld [vmem:[%s1402_s1 + $0x1c8] sm:$0xff]  ;;  %v1080_v1 = vld [vmem:[%s1402_s1 + $0x100] sm:$0xff] }
  0x24   :  { %630 = vmatpush.bf16.msrb.mxu2 %v1103_v35  ;;  %599 = vmatmul.bf16.vlgmr.msra.gmra.mxu3 %v155_v41  ;;  %v1088_v2 = vld [vmem:[%s1402_s1 + $0x140] sm:$0xff]  ;;  %v157_v6 = vld [vmem:[#allocation1 + $0x2d] sm:$0xff]  ;;  %v158_v7 = vld [vmem:[#allocation1 + $0x36] sm:$0xff] }
  0x25   :  { %643 = vmatpush.bf16.msrb.mxu3 %v1111_v36  ;;  %v1096_v3 = vld [vmem:[%s1402_s1 + $0x180] sm:$0xff]  ;;  %v1113_v9 = vld [vmem:[%s1403_s2 + $0x8] sm:$0xff]  ;;  %v1115_v18 = vld [vmem:[%s1403_s2 + $0x18] sm:$0xff] }
  0x26   :  { %605 = vmatpush.bf16.msrb.mxu0 %v1086_v37  ;;  %v1104_v4 = vld [vmem:[%s1402_s1 + $0x1c0] sm:$0xff]  ;;  %v1114_v21 = vld [vmem:[%s1403_s2 + $0x10] sm:$0xff] }
  0x27   :  { %618 = vmatpush.bf16.msrb.mxu1 %v1094_v40  ;;  %v156_v5 = vld [vmem:[#allocation1 + $0x24] sm:$0xff]  ;;  %v1118_v17 = vld [vmem:[%s1404_s3] ss:$0 sm:$0xff]  ;;  %v1119_v40 = vld [vmem:[%s1404_s3 + $0x1] ss:$0 sm:$0xff] }
  0x28   :  { %631 = vmatpush.bf16.msrb.mxu2 %v1102_v43  ;;  %v159_v8 = vld [vmem:[#allocation1 + $0x3f] sm:$0xff] }
  0x29   :  { %644 = vmatpush.bf16.msrb.mxu3 %v1110_v44  ;;  %v1112_v15 = vld [vmem:[%s1403_s2] sm:$0xff] }
  0x2a   :  { %606 = vmatpush.bf16.msrb.mxu0 %v1085_v45 }
  0x2b   :  { %619 = vmatpush.bf16.msrb.mxu1 %v1093_v46  ;;  %v730_v46 = vld [vmem:[%s1403_s2 + $0x20] sm:$0x1] }
  0x2c   :  { %632 = vmatpush.bf16.msrb.mxu2 %v1101_v47  ;;  %v1120_v47 = vld [vmem:[%s1404_s3 + $0x2] ss:$0 sm:$0xff] }
  0x2d   :  { %645 = vmatpush.bf16.msrb.mxu3 %v1109_v48  ;;  %v731_v48 = vunpack.c.l.bf16 %v730_v46 }
  0x2e   :  { %607 = vmatpush.bf16.msrb.mxu0 %v1084_v49 }
  0x2f   :  { %620 = vmatpush.bf16.msrb.mxu1 %v1092_v50 }
  0x30   :  { %633 = vmatpush.bf16.msrb.mxu2 %v1100_v51  ;;  %v732_v51 = vperm.slane %v731_v48, 0 }
  0x31   :  { %646 = vmatpush.bf16.msrb.mxu3 %v1108_v52 }
  0x32   :  { %608 = vmatpush.bf16.msrb.mxu0 %v1083_v53 }
  0x33   :  { %621 = vmatpush.bf16.msrb.mxu1 %v1091_v54 }
  0x34   :  { %634 = vmatpush.bf16.msrb.mxu2 %v1099_v55 }
  0x35   :  { %647 = vmatpush.bf16.msrb.mxu3 %v1107_v56  ;;  %v1149_v56 = vmov 2.0  }
  0x36   :  { %609 = vmatpush.bf16.msrb.mxu0 %v1082_v57  ;;  %1121 = vrcp.f32 %v1149_v56 }
  0x37   :  { %622 = vmatpush.bf16.msrb.mxu1 %v1090_v58 }
  0x38   :  { %635 = vmatpush.bf16.msrb.mxu2 %v1098_v59 }
  0x39   :  { %648 = vmatpush.bf16.msrb.mxu3 %v1106_v60 }
  0x3a   :  { %610 = vmatpush.bf16.msrb.mxu0 %v1081_v61 }
  0x3b   :  { %623 = vmatpush.bf16.msrb.mxu1 %v1089_v62 }
  0x3c   :  { %636 = vmatpush.bf16.msrb.mxu2 %v1097_v63  ;;  %v1122_v57 = vpop.eup %1121 }
  0x3d   :  { %649 = vmatpush.bf16.msrb.mxu3 %v1105_v0  ;;  %v747_v58 = vmul.f32 2.0, %v1122_v57  ;;  %vm751_vm3 = vweird.f32 %v1122_v57 }
  0x3e   :  { %611 = vmatpush.bf16.msrb.mxu0 %v1080_v1 }
  0x3f   :  { %624 = vmatpush.bf16.msrb.mxu1 %v1088_v2  ;;  %v748_v59 = vsub.f32 1.0, %v747_v58 }
  0x40   :  { %637 = vmatpush.bf16.msrb.mxu2 %v1096_v3 }
  0x41   :  { %650 = vmatpush.bf16.msrb.mxu3 %v1104_v4  ;;  %612 = vmatmul.bf16.vlgmr.msrb.gmra.mxu0 %v156_v5  ;;  %v749_v63 = vmul.f32 %v1122_v57, %v748_v59 }
  0x42   :  { %625 = vmatmul.bf16.vlgmr.msrb.gmra.mxu1 %v157_v6  ;;  %686 = vmatpush.bf16.msra.mxu0 %v1113_v9 }
  0x43   :  { %638 = vmatmul.bf16.vlgmr.msrb.gmra.mxu2 %v158_v7  ;;  %722 = vmatpush.bf16.msra.mxu1 %v1115_v18  ;;  %v750_v2 = vadd.f32 %v1122_v57, %v749_v63  ;;  %v754_v7 = vld [vmem:[%s1404_s3 + $0x3] sm:$0x1] }
  0x44   :  { %651 = vmatmul.bf16.vlgmr.msrb.gmra.mxu3 %v159_v8 }
  0x45   :  { %v752_v5 = vsel %vm751_vm3, %v1122_v57, %v750_v2 }
  0x46   :  { %687 = vmatpush.bf16.msra.mxu0 %v1112_v15 }
  0x47   :  { %723 = vmatpush.bf16.msra.mxu1 %v1114_v21 }
  0x9e   :  { %v561_v10 = vpop.f32.mrf.mxu0 }
  0x9f   :  { %v574_v11 = vpop.f32.mrf.mxu1  ;;  %v562_v22 = vadd.f32 %v1118_v17, %v561_v10 }
  0xa1   :  { %v575_v23 = vadd.f32 %v574_v11, %v562_v22 }
  0xa6   :  { %v587_v12 = vpop.f32.mrf.mxu2  ;;  %v563_v14 = vpop.f32.mrf.mxu0 }
  0xa7   :  { %v600_v13 = vpop.f32.mrf.mxu3  ;;  %v576_v16 = vpop.f32.mrf.mxu1  ;;  %v588_v24 = vadd.f32 %v587_v12, %v575_v23 }
  0xa9   :  { %v601_v25 = vadd.f32 %v600_v13, %v588_v24 }
  0xae   :  { %v589_v19 = vpop.f32.mrf.mxu2 }
  0xaf   :  { %v602_v20 = vpop.f32.mrf.mxu3 }
  0xbe   :  { %v613_v26 = vpop.f32.mrf.mxu0 }
  0xbf   :  { %v626_v27 = vpop.f32.mrf.mxu1  ;;  %v614_v28 = vadd.f32 %v613_v26, %v601_v25 }
  0xc1   :  { %v627_v29 = vadd.f32 %v626_v27, %v614_v28 }
  0xc6   :  { %v639_v30 = vpop.f32.mrf.mxu2  ;;  %v615_v33 = vpop.f32.mrf.mxu0 }
  0xc7   :  { %v652_v31 = vpop.f32.mrf.mxu3  ;;  %v640_v32 = vadd.f32 %v639_v30, %v627_v29  ;;  %v628_v34 = vpop.f32.mrf.mxu1 }
  0xc9   :  { %v653_v35 = vadd.f32 %v652_v31, %v640_v32 }
  0xcb   :  { %v656_v36 = vmax.f32 %v653_v35, 0.0 }
  0xcd   :  { %v657_v37 = vpack.c.bf16 %v656_v36, %v656_v36 }
  0xce   :  { %v641_v38 = vpop.f32.mrf.mxu2 }
  0xcf   :  { %v654_v39 = vpop.f32.mrf.mxu3  ;;  %1038 = vmatmul.msk.bf16.vlgmr.msra.gmra.mxu0 %vm676_vm0, %v657_v37 }
 0x14c   :  { %v689_v41 = vpop.f32.mrf.mxu0 }
 0x14d   :  { %v690_v42 = vadd.f32 %v1119_v40, %v689_v41 }
 0x14f   :  { %v693_v43 = vmax.f32 %v690_v42, 0.0 }
 0x151   :  { %v694_v44 = vpack.c.bf16 %v693_v43, %v693_v43 }
 0x153   :  { %1047 = vmatmul.msk.bf16.vlgmr.msra.gmra.mxu1 %vm676_vm0, %v694_v44 }
 0x154   :  { %v691_v45 = vpop.f32.mrf.mxu0 }
 0x1d0   :  { %v725_v49 = vpop.f32.mrf.mxu1 }
 0x1d1   :  { %v726_v50 = vadd.f32 %v1120_v47, %v725_v49 }
 0x1d3   :  { %v729_v52 = vmax.f32 %v726_v50, 0.0 }
 0x1d5   :  { %v733_v53 = vmul.f32 %v732_v51, %v729_v52 }
 0x1d7   :  { %v735_v54 = vsel %vm734_vm1, %v733_v53, 0.0 }
 0x1d8   :  { %v727_v55 = vpop.f32.mrf.mxu1  ;;  %736 = vadd.xlane.f32.xlu0 %v735_v54 }
 0x24b   :  { %v737_v60 = vpop.xlane.xlu0 %736 }
 0x24c   :  { %v739_v61 = vsel %vm738_vm2, %v737_v60, 0.0 }
 0x24d   :  { %v740_v62 = vrot.slane %v739_v61, 4 }
 0x24f   :  { %v741_v0 = vadd.f32 %v740_v62, %v739_v61 }
 0x251   :  { %v742_v1 = vrot.slane %v741_v0, 2 }
 0x253   :  { %v743_v3 = vadd.f32 %v742_v1, %v741_v0 }
 0x255   :  { %v744_v4 = vrot.slane %v743_v3, 1 }
 0x257   :  { %v745_v6 = vadd.f32 %v744_v4, %v743_v3 }
 0x259   :  { %v753_v8 = vmul.f32 %v752_v5, %v745_v6 }
 0x25b   :  { %v755_v9 = vadd.f32 %v754_v7, %v753_v8 }
 0x25d   :  { %757 = vst.msk [vmem:[#allocation2] sm:$0x1] %vm756_vm4, %v755_v9 }
 0x25e   :  { %768 = dma.vmem_to_hbm [thread:$0]  %s764_s28, 16, %s766_s0, [#allocation3]  }
 0x25f   :  { %1147 = dma.done.wait [#allocation3], 16  }
 0x260   :  { %1148 = vsyncadd [#allocation3], 4294967280 }
 0x261   :  { %773 = vsyncpa [#allocation3], 1 }

</bundles_post_ra>
